<compile_context>
chip_gen: v7x
topology: tpu7x:2x2x1
jax: 0.10.0
libtpu: 0.0.40
codegen_flags: <defaults>
</compile_context>

<pallas_src>
import jax
import jax.numpy as jnp
from jax.experimental import pallas as pl
from jax.experimental.pallas import tpu as pltpu


def _attention4_kernel(q_ref, k_ref, v_ref, w_ref,
                       att_soft_ref, att_sig_ref, p_soft_ref, p_sig_ref):
    q = q_ref[...]            # (B, Sq, H)
    k = k_ref[...]            # (B, Sk, H)
    v = v_ref[...]            # (B, Sk, H)
    w = w_ref[...]            # (H, H)
    B = q.shape[0]
    H = w.shape[0]

    # ---- att_input = Q @ w_omega -------------------------------------------
    # Broadcast w over batch (cheap outer-dim replication) and contract the
    # hidden dim with a batched einsum: avoids the (B,Sq,H)<->(B*Sq,H)
    # sublane-relayout reshapes of the previous version.
    w_b = jnp.broadcast_to(w, (B, H, H))                              # (B, H, H)
    att_input = jnp.einsum(
        "bqh,bhd->bqd", q, w_b, preferred_element_type=jnp.float32
    )                                                                 # (B, Sq, H)

    # ---- probs = att_input @ K^T : contract last dims (no K transpose) ------
    probs = jnp.einsum(
        "bqh,bkh->bqk", att_input, k, preferred_element_type=jnp.float32
    )                                                                 # (B, Sq, Sk)

    # ---- hard-threshold path first (no transcendental dependency) -----------
    # sigmoid(x) > 0.5  <=>  x > 0  (monotone, sigmoid(0)=0.5): exact.
    probs_hat = (probs > 0.0).astype(jnp.float32)                     # (B, Sq, Sk)
    att_sig = jnp.einsum(
        "bqk,bkh->bqh", probs_hat, v, preferred_element_type=jnp.float32
    )                                                                 # (B, Sq, H)
    att_sig_ref[...] = att_sig.astype(att_sig_ref.dtype)

    # ---- numerically-stable softmax over the last dim -----------------------
    m = jnp.max(probs, axis=-1, keepdims=True)
    e = jnp.exp(probs - m)
    denom = jnp.sum(e, axis=-1, keepdims=True)
    # exact reciprocal (approx=True would risk 1e-5 parity with the reference)
    p_soft = e * pl.reciprocal(denom, approx=False)                   # (B, Sq, Sk)
    p_soft_ref[...] = p_soft.astype(p_soft_ref.dtype)

    att_soft = jnp.einsum(
        "bqk,bkh->bqh", p_soft, v, preferred_element_type=jnp.float32
    )                                                                 # (B, Sq, H)
    att_soft_ref[...] = att_soft.astype(att_soft_ref.dtype)

    # ---- sigmoid only feeds its own output path ------------------------------
    p_sig_ref[...] = jax.nn.sigmoid(probs).astype(p_sig_ref.dtype)


@jax.jit
def attention_4_forward(input_Q, input_K, input_V, w_omega):
    """Pallas implementation of Attention_4.forward.

    input_Q: (B, Sq, H), input_K: (B, Sk, H), input_V: (B, Sk, H), w_omega: (H, H)
    Returns (att_output_softmax, att_output_sigmod, probs_softmax, probs_sigmod),
    each with dim 1 squeezed iff it has size 1 (matching torch's .squeeze(1)).
    """
    B, Sq, H = input_Q.shape
    Sk = input_K.shape[1]
    dt = input_Q.dtype
    itemsize = jnp.dtype(dt).itemsize

    # Advisory cost estimate: tiny kernel — keep XLA from over-serializing
    # surrounding ops.
    flops = (2 * B * Sq * H * H          # Q @ w_omega
             + 2 * B * Sq * Sk * H       # att_input @ K^T
             + 2 * 2 * B * Sq * Sk * H   # two P @ V
             + 8 * B * Sq * Sk)          # softmax/threshold elementwise
    transcendentals = 2 * B * Sq * Sk    # exp + sigmoid
    bytes_accessed = itemsize * (
        B * Sq * H + 2 * B * Sk * H + H * H          # inputs
        + 2 * B * Sq * H + 2 * B * Sq * Sk           # outputs
    )
    cost = pl.CostEstimate(flops=flops, transcendentals=transcendentals,
                           bytes_accessed=bytes_accessed)

    vmem_spec = pl.BlockSpec(memory_space=pltpu.MemorySpace.VMEM)
    out_shapes = (
        jax.ShapeDtypeStruct((B, Sq, H), dt),    # att_output_softmax
        jax.ShapeDtypeStruct((B, Sq, H), dt),    # att_output_sigmod
        jax.ShapeDtypeStruct((B, Sq, Sk), dt),   # probs_softmax
        jax.ShapeDtypeStruct((B, Sq, Sk), dt),   # probs_sigmod
    )

    # TODO(synk): if this module is invoked once per RNN timestep, fold that
    # loop into a single pallas_call (extra "parallel" grid axis over steps,
    # feeding both TensorCores on v7x) — launch overhead dominates at this size.
    att_soft, att_sig, p_soft, p_sig = pl.pallas_call(
        _attention4_kernel,
        out_shape=out_shapes,
        in_specs=[vmem_spec, vmem_spec, vmem_spec, vmem_spec],
        out_specs=(vmem_spec, vmem_spec, vmem_spec, vmem_spec),
        cost_estimate=cost,
    )(input_Q, input_K, input_V, w_omega)

    # torch .squeeze(1): only drops the axis if it has size 1
    def _sq1(x):
        return jnp.squeeze(x, axis=1) if x.shape[1] == 1 else x

    return _sq1(att_soft), _sq1(att_sig), _sq1(p_soft), _sq1(p_sig)


if __name__ == "__main__":
    # Module config: num_nodes=4, rnn_units=8 -> hidden_state_size H = 32
    num_nodes, rnn_units = 4, 8
    H = num_nodes * rnn_units
    B, Sq, Sk = 2, 1, 8   # Sq=1 matches the .squeeze(1) usage in the module

    key = jax.random.PRNGKey(0)
    kq, kk, kv, kw = jax.random.split(key, 4)
    input_Q = jax.random.normal(kq, (B, Sq, H), dtype=jnp.float32)
    input_K = jax.random.normal(kk, (B, Sk, H), dtype=jnp.float32)
    input_V = jax.random.normal(kv, (B, Sk, H), dtype=jnp.float32)
    # w_omega: nn.Parameter(torch.Tensor(H, H)) is uninitialized in the
    # reference; use a deterministic normal init here.
    w_omega = 0.1 * jax.random.normal(kw, (H, H), dtype=jnp.float32)

    outs = attention_4_forward(input_Q, input_K, input_V, w_omega)
    outs = jax.block_until_ready(outs)

    # Pure-JAX reference of the same math.
    att_input = jnp.matmul(input_Q, w_omega)
    probs = jnp.matmul(att_input, jnp.swapaxes(input_K, 1, 2))
    ref_soft = jax.nn.softmax(probs, axis=-1)
    ref_sig = jax.nn.sigmoid(probs)
    ref_hat = (ref_sig > 0.5).astype(ref_soft.dtype)
    ref_out_soft = jnp.matmul(ref_soft, input_V).squeeze(1)
    ref_out_sig = jnp.matmul(ref_hat, input_V).squeeze(1)
    ref = (ref_out_soft, ref_out_sig, ref_soft.squeeze(1), ref_sig.squeeze(1))

    for got, want in zip(outs, ref):
        assert got.shape == want.shape, (got.shape, want.shape)
        assert jnp.allclose(got, want, atol=1e-5, rtol=1e-5)

    print("KERNEL_OK")
</pallas_src>

<mosaic_0001>
module attributes {stable_mosaic.version = 11 : i64} {
  func.func @_attention4_kernel(%arg0: memref<2x1x32xf32, #tpu.memory_space<vmem>>, %arg1: memref<2x8x32xf32, #tpu.memory_space<vmem>>, %arg2: memref<2x8x32xf32, #tpu.memory_space<vmem>>, %arg3: memref<32x32xf32, #tpu.memory_space<vmem>>, %arg4: memref<2x1x32xf32, #tpu.memory_space<vmem>>, %arg5: memref<2x1x32xf32, #tpu.memory_space<vmem>>, %arg6: memref<2x1x8xf32, #tpu.memory_space<vmem>>, %arg7: memref<2x1x8xf32, #tpu.memory_space<vmem>>) attributes {dimension_semantics = [], scalar_prefetch = 0 : i64, scratch_operands = 0 : i64, tpu.core_type = #tpu.core_type<tc>} {
    %c0 = arith.constant 0 : index
    %c0_0 = arith.constant 0 : index
    %c0_1 = arith.constant 0 : index
    %0 = vector.load %arg0[%c0, %c0_0, %c0_1] : memref<2x1x32xf32, #tpu.memory_space<vmem>>, vector<2x1x32xf32>
    %c0_2 = arith.constant 0 : index
    %c0_3 = arith.constant 0 : index
    %c0_4 = arith.constant 0 : index
    %1 = vector.load %arg1[%c0_2, %c0_3, %c0_4] : memref<2x8x32xf32, #tpu.memory_space<vmem>>, vector<2x8x32xf32>
    %c0_5 = arith.constant 0 : index
    %c0_6 = arith.constant 0 : index
    %c0_7 = arith.constant 0 : index
    %2 = vector.load %arg2[%c0_5, %c0_6, %c0_7] : memref<2x8x32xf32, #tpu.memory_space<vmem>>, vector<2x8x32xf32>
    %c0_8 = arith.constant 0 : index
    %c0_9 = arith.constant 0 : index
    %3 = vector.load %arg3[%c0_8, %c0_9] : memref<32x32xf32, #tpu.memory_space<vmem>>, vector<32x32xf32>
    %4 = vector.shape_cast %3 : vector<32x32xf32> to vector<1x32x32xf32>
    %5 = vector.broadcast %4 : vector<1x32x32xf32> to vector<2x32x32xf32>
    "tpu.trace_start"() <{level = 10 : i32, message = "bqh,bhd->bqd"}> : () -> ()
    %cst = arith.constant dense<0.000000e+00> : vector<2x1x32xf32>
    %6 = tpu.matmul %0, %5, %cst {dimension_numbers = #tpu.dot_dimension_numbers<[2], [1], [1], [2], [0, 0, 0, 1, 1, 2], [0], [0]>} : vector<2x1x32xf32>, vector<2x32x32xf32>, vector<2x1x32xf32> -> vector<2x1x32xf32>
    "tpu.trace_stop"() : () -> ()
    "tpu.trace_start"() <{level = 10 : i32, message = "bqh,bkh->bqk"}> : () -> ()
    %cst_10 = arith.constant dense<0.000000e+00> : vector<2x1x8xf32>
    %7 = tpu.matmul %6, %1, %cst_10 {dimension_numbers = #tpu.dot_dimension_numbers<[2], [2], [1], [1], [0, 0, 0, 1, 1, 1], [0], [0]>} : vector<2x1x32xf32>, vector<2x8x32xf32>, vector<2x1x8xf32> -> vector<2x1x8xf32>
    %cst_11 = arith.constant 0.000000e+00 : f32
    "tpu.trace_stop"() : () -> ()
    %8 = vector.broadcast %cst_11 : f32 to vector<2x1x8xf32>
    %9 = arith.cmpf ogt, %7, %8 : vector<2x1x8xf32>
    %10 = arith.extui %9 : vector<2x1x8xi1> to vector<2x1x8xi32>
    %11 = arith.sitofp %10 : vector<2x1x8xi32> to vector<2x1x8xf32>
    "tpu.trace_start"() <{level = 10 : i32, message = "bqk,bkh->bqh"}> : () -> ()
    %cst_12 = arith.constant dense<0.000000e+00> : vector<2x1x32xf32>
    %12 = tpu.matmul %11, %2, %cst_12 {dimension_numbers = #tpu.dot_dimension_numbers<[2], [1], [1], [2], [0, 0, 0, 1, 1, 2], [0], [0]>} : vector<2x1x8xf32>, vector<2x8x32xf32>, vector<2x1x32xf32> -> vector<2x1x32xf32>
    "tpu.trace_stop"() : () -> ()
    %c0_13 = arith.constant 0 : index
    %c0_14 = arith.constant 0 : index
    %c0_15 = arith.constant 0 : index
    %13 = vector.load %arg5[%c0_13, %c0_14, %c0_15] : memref<2x1x32xf32, #tpu.memory_space<vmem>>, vector<2x1x32xf32>
    tpu.vector_store %arg5[%c0_13, %c0_14, %c0_15], %12 {strides = array<i32>} : memref<2x1x32xf32, #tpu.memory_space<vmem>>, vector<2x1x32xf32>,
    %cst_16 = arith.constant dense<0xFF800000> : vector<2x1xf32>
    %14 = vector.multi_reduction <maximumf>, %7, %cst_16 [2] : vector<2x1x8xf32> to vector<2x1xf32>
    %15 = vector.shape_cast %14 : vector<2x1xf32> to vector<2x1x1xf32>
    %16 = vector.broadcast %15 : vector<2x1x1xf32> to vector<2x1x8xf32>
    %17 = arith.subf %7, %16 : vector<2x1x8xf32>
    %18 = math.exp %17 : vector<2x1x8xf32>
    %cst_17 = arith.constant dense<0.000000e+00> : vector<2x1xf32>
    %19 = vector.multi_reduction <add>, %18, %cst_17 [2] : vector<2x1x8xf32> to vector<2x1xf32>
    %20 = vector.shape_cast %19 : vector<2x1xf32> to vector<2x1x1xf32>
    %21 = tpu.reciprocal %20 : vector<2x1x1xf32> -> vector<2x1x1xf32>
    %22 = vector.broadcast %21 : vector<2x1x1xf32> to vector<2x1x8xf32>
    %23 = arith.mulf %18, %22 : vector<2x1x8xf32>
    %c0_18 = arith.constant 0 : index
    %c0_19 = arith.constant 0 : index
    %c0_20 = arith.constant 0 : index
    %24 = vector.load %arg6[%c0_18, %c0_19, %c0_20] : memref<2x1x8xf32, #tpu.memory_space<vmem>>, vector<2x1x8xf32>
    tpu.vector_store %arg6[%c0_18, %c0_19, %c0_20], %23 {strides = array<i32>} : memref<2x1x8xf32, #tpu.memory_space<vmem>>, vector<2x1x8xf32>,
    "tpu.trace_start"() <{level = 10 : i32, message = "bqk,bkh->bqh"}> : () -> ()
    %cst_21 = arith.constant dense<0.000000e+00> : vector<2x1x32xf32>
    %25 = tpu.matmul %23, %2, %cst_21 {dimension_numbers = #tpu.dot_dimension_numbers<[2], [1], [1], [2], [0, 0, 0, 1, 1, 2], [0], [0]>} : vector<2x1x8xf32>, vector<2x8x32xf32>, vector<2x1x32xf32> -> vector<2x1x32xf32>
    "tpu.trace_stop"() : () -> ()
    %c0_22 = arith.constant 0 : index
    %c0_23 = arith.constant 0 : index
    %c0_24 = arith.constant 0 : index
    %26 = vector.load %arg4[%c0_22, %c0_23, %c0_24] : memref<2x1x32xf32, #tpu.memory_space<vmem>>, vector<2x1x32xf32>
    tpu.vector_store %arg4[%c0_22, %c0_23, %c0_24], %25 {strides = array<i32>} : memref<2x1x32xf32, #tpu.memory_space<vmem>>, vector<2x1x32xf32>,
    %27 = arith.negf %7 : vector<2x1x8xf32>
    %28 = math.exp %27 : vector<2x1x8xf32>
    %cst_25 = arith.constant 1.000000e+00 : f32
    %29 = vector.broadcast %cst_25 : f32 to vector<2x1x8xf32>
    %30 = arith.addf %29, %28 : vector<2x1x8xf32>
    %31 = arith.divf %29, %30 : vector<2x1x8xf32>
    %c0_26 = arith.constant 0 : index
    %c0_27 = arith.constant 0 : index
    %c0_28 = arith.constant 0 : index
    %32 = vector.load %arg7[%c0_26, %c0_27, %c0_28] : memref<2x1x8xf32, #tpu.memory_space<vmem>>, vector<2x1x8xf32>
    tpu.vector_store %arg7[%c0_26, %c0_27, %c0_28], %31 {strides = array<i32>} : memref<2x1x8xf32, #tpu.memory_space<vmem>>, vector<2x1x8xf32>,
    return
  }
}

</mosaic_0001>

<bundles_post_ra>
// kernel: attention_4_forward.1
= control target key start
LH: loop header
LB: loop body
LE: loop exit
PB: predicated region body
PF: predicated region fallthrough
CT: control target
= control target key end

     0   :  { %13 = vsyncpa [#allocation3], 0  ;;  %s1344_s0 = inlined_call_operand.hbm [shape: f32[2,1,32], index: 0, kind: input, shape index: {}]   ;;  %s1345_s1 = inlined_call_operand.hbm [shape: f32[2,8,32], index: 1, kind: input, shape index: {}]   ;;  %s1346_s2 = inlined_call_operand.hbm [shape: f32[2,8,32], index: 2, kind: input, shape index: {}]   ;;  %s1347_s3 = inlined_call_operand.hbm [shape: f32[32,32], index: 3, kind: input, shape index: {}]   ;;  %s1348_s4 = inlined_call_operand.hbm [shape: f32[2,1,32], index: 4, kind: output, shape index: {0}]   ;;  %s1349_s5 = inlined_call_operand.hbm [shape: f32[2,1,32], index: 5, kind: output, shape index: {1}]   ;;  %s1350_s6 = inlined_call_operand.hbm [shape: f32[2,1,8], index: 6, kind: output, shape index: {2}]   ;;  %s1351_s7 = inlined_call_operand.hbm [shape: f32[2,1,8], index: 7, kind: output, shape index: {3}]  }
   0x1   :  { %14 = vsyncpa [#allocation6], 0 }
   0x2   :  { %15 = vsyncpa [#allocation9], 0 }
   0x3   :  { %16 = vsyncpa [#allocation4], 0 }
   0x4   :  { %17 = vsyncpa [#allocation12], 0 }
   0x5   :  { %18 = vsyncpa [#allocation15], 0  ;;  %s1116_s24 = smov [#allocation5]   ;;  %s928_s28 = scalar_lea.hbm %s1345_s1, 256 }
   0x6   :  { %s36_s25 = sshll.u32 %s1116_s24, 4  ;;  %p929_p0 = scmp.ne.s32.totalorder %s1345_s1, %s928_s28  ;;  %s37_s25 = int_to_ptr.vmem [resolvable:$true] %s36_s25 }
   0x7   :  { %p932_p1 = scmp.lt.u32.totalorder %s928_s28, %s1345_s1 }
   0x9   :  { %p934_p2 = pnand %p932_p1, %p929_p0 }
   0xb   :  { %937 = shalt.err (!%p934_p2)
}
   0xc   :  { %s938_s10 = scalar_lea.vmem %s37_s25, 256  ;;  %p943_p4 = scmp.lt.s32.totalorder %s37_s25, %s37_s25 }
   0xd   :  { %p939_p3 = scmp.ne.s32.totalorder %s37_s25, %s938_s10  ;;  %p944_p5 = scmp.lt.s32.totalorder %s938_s10, %s938_s10 }
   0xf   :  { %p945_p6 = por %p944_p5, %p943_p4 }
  0x11   :  { %p946_p7 = pnand %p945_p6, %p939_p3 }
  0x13   :  { %949 = shalt.err (!%p946_p7)
}
  0x14   :  { %s1117_s11 = smov 128   ;;  %s1118_s12 = smov 8  }
  0x15   :  { %42 = dma.hbm_to_vmem [thread:$0]  %s1345_s1, 256, %s37_s25, [#allocation6], %s1117_s11, %s1117_s11, %s1118_s12  }
  0x16   :  { %s1119_s15 = smov [#allocation2]   ;;  %s950_s19 = scalar_lea.hbm %s1344_s0, 32 }
  0x17   :  { %s24_s16 = sshll.u32 %s1119_s15, 4  ;;  %p951_p8 = scmp.ne.s32.totalorder %s1344_s0, %s950_s19  ;;  %s25_s16 = int_to_ptr.vmem [resolvable:$true] %s24_s16 }
  0x18   :  { %p954_p9 = scmp.lt.u32.totalorder %s950_s19, %s1344_s0 }
  0x1a   :  { %p956_p10 = pnand %p954_p9, %p951_p8 }
  0x1c   :  { %959 = shalt.err (!%p956_p10)
}
  0x1d   :  { %s960_s24 = scalar_lea.vmem %s25_s16, 32  ;;  %p965_p12 = scmp.lt.s32.totalorder %s25_s16, %s25_s16 }
  0x1e   :  { %p961_p11 = scmp.ne.s32.totalorder %s25_s16, %s960_s24  ;;  %p966_p13 = scmp.lt.s32.totalorder %s960_s24, %s960_s24 }
  0x20   :  { %p967_p0 = por %p966_p13, %p965_p12 }
  0x22   :  { %p968_p1 = pnand %p967_p0, %p961_p11 }
  0x24   :  { %971 = shalt.err (!%p968_p1)
}
  0x25   :  { %s1120_s1 = smov 16   ;;  %s1121_s25 = smov 1  }
  0x26   :  { %30 = dma.hbm_to_vmem [thread:$0]  %s1344_s0, 32, %s25_s16, [#allocation3], %s1120_s1, %s1120_s1, %s1121_s25  }
  0x27   :  { %s1122_s28 = smov [#allocation7]   ;;  %s1123_s30 = smov [#allocation8]  }
  0x28   :  { %s48_s29 = sshll.u32 %s1122_s28, 4  ;;  %s60_s8 = sshll.u32 %s1123_s30, 4  ;;  %s49_s29 = int_to_ptr.vmem [resolvable:$true] %s48_s29  ;;  %s1201_s8 = int_to_ptr.vmem [resolvable:$true] %s60_s8 }
  0x29   :  { %s972_s13 = scalar_lea.hbm %s1346_s2, 256 }
  0x2a   :  { %p973_p2 = scmp.ne.s32.totalorder %s1346_s2, %s972_s13  ;;  %p976_p3 = scmp.lt.u32.totalorder %s972_s13, %s1346_s2 }
  0x2c   :  { %p978_p4 = pnand %p976_p3, %p973_p2 }
  0x2e   :  { %981 = shalt.err (!%p978_p4)
}
  0x2f   :  { %s982_s0 = scalar_lea.vmem %s49_s29, 256  ;;  %p987_p6 = scmp.lt.s32.totalorder %s49_s29, %s49_s29 }
  0x30   :  { %p983_p5 = scmp.ne.s32.totalorder %s49_s29, %s982_s0  ;;  %p988_p7 = scmp.lt.s32.totalorder %s982_s0, %s982_s0 }
  0x32   :  { %p989_p8 = por %p988_p7, %p987_p6 }
  0x34   :  { %p990_p9 = pnand %p989_p8, %p983_p5 }
  0x36   :  { %993 = shalt.err (!%p990_p9)
}
  0x37   :  { %54 = dma.hbm_to_vmem [thread:$0]  %s1346_s2, 256, %s49_s29, [#allocation6], %s1117_s11, %s1117_s11, %s1118_s12  }
  0x38   :  { %s994_s22 = scalar_lea.hbm %s1347_s3, 512 }
  0x39   :  { %p995_p10 = scmp.ne.s32.totalorder %s1347_s3, %s994_s22  ;;  %p998_p11 = scmp.lt.u32.totalorder %s994_s22, %s1347_s3 }
  0x3b   :  { %p1000_p12 = pnand %p998_p11, %p995_p10 }
  0x3d   :  { %1003 = shalt.err (!%p1000_p12)
}
  0x3e   :  { %s1004_s28 = scalar_lea.vmem %s1201_s8, 512  ;;  %p1009_p0 = scmp.lt.s32.totalorder %s1201_s8, %s1201_s8 }
  0x3f   :  { %p1005_p13 = scmp.ne.s32.totalorder %s1201_s8, %s1004_s28  ;;  %p1010_p1 = scmp.lt.s32.totalorder %s1004_s28, %s1004_s28 }
  0x41   :  { %p1011_p2 = por %p1010_p1, %p1009_p0 }
  0x43   :  { %p1012_p3 = pnand %p1011_p2, %p1005_p13 }
  0x45   :  { %1015 = shalt.err (!%p1012_p3)
}
  0x46   :  { %66 = dma.hbm_to_vmem [thread:$0]  %s1347_s3, 512, %s1201_s8, [#allocation9], %s1117_s11, %s1117_s11, %s1118_s12  }
  0x47   :  { %1104 = dma.done.wait [#allocation3], 32  }
  0x48   :  { %1105 = vsyncadd [#allocation3], 4294967264 }
  0x49   :  { %1106 = dma.done.wait [#allocation6], 512  }
  0x4a   :  { %1107 = vsyncadd [#allocation6], 4294966784 }
  0x4b   :  { %1108 = dma.done.wait [#allocation9], 512  }
  0x4c   :  { %1109 = vsyncadd [#allocation9], 4294966784  ;;  %v1124_v0 = vmov 0.0|0.0   ;;  %vm1125_vm0 = vmmov 0   ;;  %v1126_v1 = vmov 0.0   ;;  %v85_v2 = vld [vmem:[#allocation8] sm:$0xff] }
  0x4d   :  { %885 = vmatprep.subr.bf16.mxu0 %v1124_v0  ;;  %891 = vmatprep.subr.bf16.mxu1 %v1124_v0  ;;  %v86_v3 = vld [vmem:[#allocation8 + $0x8] sm:$0xff]  ;;  %v87_v4 = vld [vmem:[#allocation8 + $0x10] sm:$0xff]  ;;  %v88_v6 = vld [vmem:[#allocation8 + $0x18] sm:$0xff]  ;;  %vm89_vm1 = vcmask 261120   ;;  %vm544_vm2 = vcmask 57344   ;;  %vm394_vm3 = vcmask 64512  }
  0x4e   :  { %841 = vmatprep.mubr.msk.f32.mxu0 %vm1125_vm0, %v1126_v1  ;;  %852 = vmatprep.mubr.msk.f32.mxu1 %vm1125_vm0, %v1126_v1  ;;  %v886_v5 = vpack.c.bf16 %v86_v3, %v85_v2  ;;  %v889_v7 = vpack.c.bf16 %v88_v6, %v87_v4  ;;  %v79_v8 = vld [vmem:[#allocation2] sm:$0x1]  ;;  %v80_v9 = vld [vmem:[#allocation2 + $0x1] sm:$0x1]  ;;  %v81_v10 = vld [vmem:[#allocation5] sm:$0xff]  ;;  %vm541_vm6 = vcmask 253952  }
  0x4f   :  { %v82_v11 = vld [vmem:[#allocation5 + $0x8] sm:$0xff]  ;;  %v83_v16 = vld [vmem:[#allocation7] sm:$0xff]  ;;  %v84_v17 = vld [vmem:[#allocation7 + $0x8] sm:$0xff]  ;;  %s1127_s3 = smov [#allocation11]  }
  0x50   :  { %887 = vmatpush3.bf16.msra.mxu0 %v886_v5  ;;  %893 = vmatpush3.bf16.msra.mxu1 %v886_v5  ;;  %s748_s11 = sshll.u32 %s1127_s3, 4  ;;  %s749_s11 = int_to_ptr.vmem [resolvable:$true] %s748_s11 }
  0x51   :  { %888 = vmatprep.subr.bf16.mxu0 %v1124_v0  ;;  %894 = vmatprep.subr.bf16.mxu1 %v1124_v0  ;;  %s1016_s12 = scalar_lea.vmem %s749_s11, 32  ;;  %p1021_p5 = scmp.lt.s32.totalorder %s749_s11, %s749_s11 }
  0x52   :  { %p1017_p4 = scmp.ne.s32.totalorder %s749_s11, %s1016_s12  ;;  %p1022_p6 = scmp.lt.s32.totalorder %s1016_s12, %s1016_s12 }
  0x54   :  { %890 = vmatpush3.bf16.msra.mxu0 %v889_v7  ;;  %896 = vmatpush3.bf16.msra.mxu1 %v889_v7  ;;  %p1023_p7 = por %p1022_p6, %p1021_p5 }
  0x55   :  { %855 = vmatprep.subr.mxu0 %v1126_v1  ;;  %860 = vmatprep.subr.mxu1 %v1126_v1 }
  0x56   :  { %p1024_p8 = pnand %p1023_p7, %p1017_p4 }
  0x57   :  { %842 = vmatmul.mubr.msk.f32.vlgmr.msra.gmra.mrb[0].mxu0 %vm89_vm1, %v79_v8  ;;  %853 = vmatmul.mubr.msk.f32.vlgmr.msra.gmra.mrb[0].mxu1 %vm89_vm1, %v80_v9 }
  0x58   :  { %857 = vmatprep.mubr.msk.f32.mxu0 %vm1125_vm0, %v1126_v1  ;;  %862 = vmatprep.mubr.msk.f32.mxu1 %vm1125_vm0, %v1126_v1 }
  0x5d   :  { %856 = vmatpush3.xpose.msk.msra.mxu0 %vm89_vm1, %v81_v10  ;;  %861 = vmatpush3.xpose.msk.msra.mxu1 %vm89_vm1, %v82_v11 }
  0x5e   :  { %865 = vmatprep.subr.mxu0 %v1126_v1  ;;  %870 = vmatprep.subr.mxu1 %v1126_v1 }
 0x12a   :  { %v159_v12 = vpop.f32.mrb[0].mxu0  ;;  %v232_v13 = vpop.f32.mrb[0].mxu1 }
 0x12b   :  { %v843_v14 = vpop.f32.mrb[1].mxu0  ;;  %858 = vmatmul.mubr.msk.f32.vlgmr.msra.gmra.mrb[2].mxu0 %vm89_vm1, %v159_v12  ;;  %v854_v15 = vpop.f32.mrb[1].mxu1  ;;  %863 = vmatmul.mubr.msk.f32.vlgmr.msra.gmra.mrb[2].mxu1 %vm89_vm1, %v232_v13 }
 0x12c   :  { %867 = vmatprep.mubr.msk.f32.mxu0 %vm1125_vm0, %v1126_v1  ;;  %872 = vmatprep.mubr.msk.f32.mxu1 %vm1125_vm0, %v1126_v1 }
 0x12d   :  { %866 = vmatpush3.msra.mxu0 %v83_v16  ;;  %871 = vmatpush3.msra.mxu1 %v84_v17 }
 0x12e   :  { %875 = vmatprep.subr.mxu0 %v1126_v1  ;;  %880 = vmatprep.subr.mxu1 %v1126_v1 }
 0x1fe   :  { %v308_v18 = vpop.f32.mrb[2].mxu0  ;;  %v384_v19 = vpop.f32.mrb[2].mxu1 }
 0x1ff   :  { %vm388_vm4 = vcmp.gt.f32.partialorder %v308_v18, 0.0  ;;  %v809_v20 = vmul.f32 -1.442695, %v308_v18  ;;  %v859_v21 = vpop.f32.mrb[3].mxu0  ;;  %v545_v22 = vsel %vm544_vm2, %v308_v18, -inf  ;;  %vm389_vm5 = vcmp.gt.f32.partialorder %v384_v19, 0.0 }
 0x200   :  { %546 = vmax.xlane.f32.xlu0 %v545_v22  ;;  %v810_v23 = vmul.f32 -1.442695, %v384_v19  ;;  %v803_v24 = vsel %vm388_vm4, 1.0, %v1126_v1  ;;  %v864_v25 = vpop.f32.mrb[3].mxu1  ;;  %v804_v26 = vsel %vm389_vm5, 1.0, %v1126_v1  ;;  %v548_v27 = vsel %vm544_vm2, %v384_v19, -inf }
 0x201   :  { %912 = vpow2.f32 %v809_v20  ;;  %868 = vmatmul.mubr.msk.f32.vlgmr.msra.gmra.mrb[4].mxu0 %vm394_vm3, %v803_v24  ;;  %873 = vmatmul.mubr.msk.f32.vlgmr.msra.gmra.mrb[4].mxu1 %vm394_vm3, %v804_v26 }
 0x202   :  { %914 = vpow2.f32 %v810_v23  ;;  %876 = vmatpush3.msra.mxu0 %v83_v16  ;;  %877 = vmatprep.mubr.msk.f32.mxu0 %vm1125_vm0, %v1126_v1 }
 0x203   :  { %881 = vmatpush3.msra.mxu1 %v84_v17  ;;  %882 = vmatprep.mubr.msk.f32.mxu1 %vm1125_vm0, %v1126_v1 }
 0x204   :  { %549 = vmax.xlane.f32.xlu0 %v548_v27 }
 0x20b   :  { %v913_v28 = vpop.eup %912 }
 0x20c   :  { %v915_v29 = vpop.eup %914  ;;  %v723_v30 = vadd.f32 1.0, %v913_v28 }
 0x20d   :  { %v724_v31 = vadd.f32 1.0, %v915_v29 }
 0x20e   :  { %916 = vrcp.f32 %v723_v30 }
 0x20f   :  { %918 = vrcp.f32 %v724_v31 }
 0x218   :  { %v917_v32 = vpop.eup %916 }
 0x219   :  { %v919_v33 = vpop.eup %918  ;;  %729 = vst.msk [vmem:[#allocation14] sm:$0x1] %vm544_vm2, %v917_v32 }
 0x21a   :  { %730 = vst.msk [vmem:[#allocation14 + $0x1] sm:$0x1] %vm544_vm2, %v919_v33 }
 0x28d   :  { %v547_v34 = vpop.xlane.xlu0 %546 }
 0x28e   :  { %v551_v35 = vsub.f32 %v308_v18, %v547_v34 }
 0x290   :  { %v553_v36 = vmul.f32 1.442695, %v551_v35 }
 0x291   :  { %v550_v37 = vpop.xlane.xlu0 %549 }
 0x292   :  { %920 = vpow2.f32 %v553_v36  ;;  %v552_v38 = vsub.f32 %v384_v19, %v550_v37 }
 0x294   :  { %v555_v39 = vmul.f32 1.442695, %v552_v38 }
 0x296   :  { %922 = vpow2.f32 %v555_v39 }
 0x29c   :  { %v921_v40 = vpop.eup %920 }
 0x29d   :  { %v557_v41 = vsel %vm544_vm2, %v921_v40, 0.0 }
 0x29e   :  { %558 = vadd.xlane.f32.xlu1 %v557_v41 }
 0x2a0   :  { %v923_v42 = vpop.eup %922 }
 0x2a1   :  { %v560_v43 = vsel %vm544_vm2, %v923_v42, 0.0 }
 0x2a2   :  { %561 = vadd.xlane.f32.xlu1 %v560_v43 }
 0x2d4   :  { %v464_v44 = vpop.f32.mrb[4].mxu0  ;;  %v537_v45 = vpop.f32.mrb[4].mxu1 }
 0x2d5   :  { %542 = vst.msk [vmem:[#allocation11] sm:$0x1] %vm541_vm6, %v464_v44  ;;  %v869_v46 = vpop.f32.mrb[5].mxu0  ;;  %543 = vst.msk [vmem:[#allocation11 + $0x1] sm:$0x1] %vm541_vm6, %v537_v45  ;;  %v874_v47 = vpop.f32.mrb[5].mxu1 }
 0x32b   :  { %v559_v48 = vpop.xlane.xlu1 %558 }
 0x32c   :  { %924 = vrcp.f32 %v559_v48 }
 0x32f   :  { %v562_v49 = vpop.xlane.xlu1 %561 }
 0x330   :  { %926 = vrcp.f32 %v562_v49 }
 0x336   :  { %v925_v50 = vpop.eup %924 }
 0x337   :  { %v565_v51 = vmul.f32 %v925_v50, %v921_v40 }
 0x339   :  { %567 = vst.msk [vmem:[#allocation13] sm:$0x1] %vm544_vm2, %v565_v51  ;;  %878 = vmatmul.mubr.msk.f32.vlgmr.msra.gmra.mrb[6].mxu0 %vm394_vm3, %v565_v51 }
 0x33a   :  { %v927_v52 = vpop.eup %926 }
 0x33b   :  { %v566_v53 = vmul.f32 %v927_v52, %v923_v42 }
 0x33d   :  { %568 = vst.msk [vmem:[#allocation13 + $0x1] sm:$0x1] %vm544_vm2, %v566_v53  ;;  %883 = vmatmul.mubr.msk.f32.vlgmr.msra.gmra.mrb[6].mxu1 %vm394_vm3, %v566_v53 }
 0x33e   :  { %1027 = shalt.err (!%p1024_p8)
}
 0x33f   :  { %s1028_s9 = scalar_lea.hbm %s1349_s5, 32 }
 0x340   :  { %p1029_p9 = scmp.ne.s32.totalorder %s1349_s5, %s1028_s9  ;;  %p1032_p10 = scmp.lt.u32.totalorder %s1028_s9, %s1349_s5 }
 0x342   :  { %p1034_p11 = pnand %p1032_p10, %p1029_p9 }
 0x344   :  { %1037 = shalt.err (!%p1034_p11)
}
 0x345   :  { %754 = dma.vmem_to_hbm [thread:$0]  %s749_s11, 32, %s1349_s5, [#allocation12], %s1120_s1, %s1120_s1, %s1121_s25  }
 0x346   :  { %s1128_s0 = smov [#allocation13]   ;;  %s1129_s19 = smov [#allocation14]  }
 0x347   :  { %s760_s16 = sshll.u32 %s1128_s0, 4  ;;  %s772_s20 = sshll.u32 %s1129_s19, 4  ;;  %s761_s16 = int_to_ptr.vmem [resolvable:$true] %s760_s16  ;;  %s773_s20 = int_to_ptr.vmem [resolvable:$true] %s772_s20 }
 0x348   :  { %s1038_s21 = scalar_lea.vmem %s761_s16, 32  ;;  %p1043_p13 = scmp.lt.s32.totalorder %s761_s16, %s761_s16 }
 0x349   :  { %p1039_p12 = scmp.ne.s32.totalorder %s761_s16, %s1038_s21  ;;  %p1044_p0 = scmp.lt.s32.totalorder %s1038_s21, %s1038_s21 }
 0x34b   :  { %p1045_p1 = por %p1044_p0, %p1043_p13 }
 0x34d   :  { %p1046_p2 = pnand %p1045_p1, %p1039_p12 }
 0x34f   :  { %1049 = shalt.err (!%p1046_p2)
}
 0x350   :  { %s1050_s24 = scalar_lea.hbm %s1350_s6, 32 }
 0x351   :  { %p1051_p3 = scmp.ne.s32.totalorder %s1350_s6, %s1050_s24  ;;  %p1054_p4 = scmp.lt.u32.totalorder %s1050_s24, %s1350_s6 }
 0x353   :  { %p1056_p5 = pnand %p1054_p4, %p1051_p3 }
 0x355   :  { %1059 = shalt.err (!%p1056_p5)
}
 0x356   :  { %766 = dma.vmem_to_hbm [thread:$0]  %s761_s16, 32, %s1350_s6, [#allocation12], %s1120_s1, %s1120_s1, %s1121_s25  }
 0x357   :  { %s1060_s3 = scalar_lea.vmem %s773_s20, 32  ;;  %p1065_p7 = scmp.lt.s32.totalorder %s773_s20, %s773_s20 }
 0x358   :  { %p1061_p6 = scmp.ne.s32.totalorder %s773_s20, %s1060_s3  ;;  %p1066_p8 = scmp.lt.s32.totalorder %s1060_s3, %s1060_s3 }
 0x35a   :  { %p1067_p9 = por %p1066_p8, %p1065_p7 }
 0x35c   :  { %p1068_p10 = pnand %p1067_p9, %p1061_p6 }
 0x35e   :  { %1071 = shalt.err (!%p1068_p10)
}
 0x35f   :  { %s1072_s30 = scalar_lea.hbm %s1351_s7, 32 }
 0x360   :  { %p1073_p11 = scmp.ne.s32.totalorder %s1351_s7, %s1072_s30  ;;  %p1076_p12 = scmp.lt.u32.totalorder %s1072_s30, %s1351_s7 }
 0x362   :  { %p1078_p13 = pnand %p1076_p12, %p1073_p11 }
 0x364   :  { %1081 = shalt.err (!%p1078_p13)
}
 0x365   :  { %778 = dma.vmem_to_hbm [thread:$0]  %s773_s20, 32, %s1351_s7, [#allocation15], %s1120_s1, %s1120_s1, %s1121_s25  }
 0x366   :  { %s1130_s15 = smov [#allocation10]  }
 0x367   :  { %s736_s17 = sshll.u32 %s1130_s15, 4  ;;  %s737_s17 = int_to_ptr.vmem [resolvable:$true] %s736_s17 }
 0x368   :  { %s1082_s18 = scalar_lea.vmem %s737_s17, 32  ;;  %p1087_p1 = scmp.lt.s32.totalorder %s737_s17, %s737_s17 }
 0x369   :  { %p1083_p0 = scmp.ne.s32.totalorder %s737_s17, %s1082_s18  ;;  %p1088_p2 = scmp.lt.s32.totalorder %s1082_s18, %s1082_s18 }
 0x36b   :  { %p1089_p3 = por %p1088_p2, %p1087_p1 }
 0x36d   :  { %p1090_p4 = pnand %p1089_p3, %p1083_p0 }
 0x40c   :  { %v638_v54 = vpop.f32.mrb[6].mxu0 }
 0x40d   :  { %715 = vst.msk [vmem:[#allocation10] sm:$0x1] %vm541_vm6, %v638_v54  ;;  %v879_v55 = vpop.f32.mrb[7].mxu0 }
 0x410   :  { %v711_v56 = vpop.f32.mrb[6].mxu1 }
 0x411   :  { %716 = vst.msk [vmem:[#allocation10 + $0x1] sm:$0x1] %vm541_vm6, %v711_v56  ;;  %v884_v57 = vpop.f32.mrb[7].mxu1 }
 0x412   :  { %1093 = shalt.err (!%p1090_p4)
}
 0x413   :  { %s1094_s16 = scalar_lea.hbm %s1348_s4, 32 }
 0x414   :  { %p1095_p5 = scmp.ne.s32.totalorder %s1348_s4, %s1094_s16  ;;  %p1098_p6 = scmp.lt.u32.totalorder %s1094_s16, %s1348_s4 }
 0x416   :  { %p1100_p7 = pnand %p1098_p6, %p1095_p5 }
 0x418   :  { %1103 = shalt.err (!%p1100_p7)
}
 0x419   :  { %742 = dma.vmem_to_hbm [thread:$0]  %s737_s17, 32, %s1348_s4, [#allocation4], %s1120_s1, %s1120_s1, %s1121_s25  }
 0x41a   :  { %1110 = dma.done.wait [#allocation4], 32  }
 0x41b   :  { %1111 = vsyncadd [#allocation4], 4294967264 }
 0x41c   :  { %1112 = dma.done.wait [#allocation12], 64  }
 0x41d   :  { %1113 = vsyncadd [#allocation12], 4294967232 }
 0x41e   :  { %1114 = dma.done.wait [#allocation15], 32  }
 0x41f   :  { %1115 = vsyncadd [#allocation15], 4294967264 }
 0x420   :  { %791 = vsyncpa [#allocation3], 1 }
 0x421   :  { %792 = vsyncpa [#allocation6], 1 }
 0x422   :  { %793 = vsyncpa [#allocation9], 1 }
 0x423   :  { %794 = vsyncpa [#allocation4], 1 }
 0x424   :  { %795 = vsyncpa [#allocation12], 1 }
 0x425   :  { %796 = vsyncpa [#allocation15], 1 }

</bundles_post_ra>
